<compile_context>
chip_gen: v5e
topology: v5e:2x2
jax: 0.10.0
libtpu: 0.0.40
codegen_flags: <defaults>
</compile_context>

<pallas_src>
import jax
import jax.numpy as jnp
from jax.experimental import pallas as pl
from jax.experimental.pallas import tpu as pltpu


def make_mid_head_kernel(t_n, chunk, n_chunks):
    """Build the kernel for a (t_n, C_in, t_hw) activation block."""

    def kernel(x_ref, w1_ref, b1_ref, w2_ref, b2_ref, o_ref):
        # x_ref:  (t_n, C_in, t_hw)  lane-dense activation block
        # w1_ref: (hidden, C_in)     conv1 weight (1x1 conv == dense), resident
        # b1_ref: (hidden, 1)        conv1 bias
        # w2_ref: (1, hidden)        conv2 weight, resident
        # b2_ref: (1, 1) in SMEM     conv2 bias (scalar)
        # o_ref:  (t_n, 1, t_hw)     lane-dense output block
        w1 = w1_ref[...].astype(jnp.bfloat16)   # single-pass MXU matmuls
        w2 = w2_ref[...].astype(jnp.bfloat16)
        b1 = b1_ref[...]                         # (hidden, 1) f32
        b2 = b2_ref[0, 0]                        # scalar f32

        def compute_chunk(b, off):
            # (C_in, chunk) slice; bf16 for the MXU, accumulate in f32.
            xb = x_ref[b, :, pl.ds(off, chunk)].astype(jnp.bfloat16)
            h = jnp.dot(w1, xb, preferred_element_type=jnp.float32)   # (hidden, chunk)
            h = jnp.maximum(h + b1, 0.0).astype(jnp.bfloat16)          # ReLU
            y = jnp.dot(w2, h, preferred_element_type=jnp.float32)     # (1, chunk)
            o_ref[b, :, pl.ds(off, chunk)] = jnp.tanh(y + b2).astype(o_ref.dtype)

        for b in range(t_n):  # static unroll over folded batch rows
            if n_chunks == 1:
                compute_chunk(b, 0)
            else:
                # Partially-unrolled inner loop keeps h in vregs per chunk.
                unroll = 1
                for u in (8, 4, 2):
                    if n_chunks % u == 0:
                        unroll = u
                        break

                def body(c, carry, _b=b):
                    compute_chunk(_b, pl.multiple_of(c * chunk, chunk))
                    return carry

                jax.lax.fori_loop(0, n_chunks, body, None, unroll=unroll)

    return kernel


def mid_head_forward(x_nchw, w1, b1, w2, b2, *, target_block_bytes=2 << 20,
                     vmem_budget_bytes=12 << 20):
    """x_nchw: (N, C_in, H, W).
    w1: (hidden, C_in), b1: (hidden, 1), w2: (1, hidden), b2: (1, 1).
    Returns (N, 1, H, W) float32 = tanh(conv2(relu(conv1(x)))).
    """
    N, C_in, H, W = x_nchw.shape
    hidden = w1.shape[0]
    HW = H * W
    in_bytes = jnp.dtype(x_nchw.dtype).itemsize

    # Free view of NCHW: flatten the spatial dims onto the lane axis.
    x = x_nchw.reshape(N, C_in, HW)

    # ---- choose the (t_n, C_in, t_hw) block ------------------------------
    # Target ~target_block_bytes of input payload per grid step, capped so the
    # double-buffered x + out blocks stay within the default scoped VMEM.
    lanes_target = max(128, target_block_bytes // max(1, C_in * in_bytes))
    per_lane_vmem = 2 * C_in * in_bytes + 2 * 4          # x dbuf + out dbuf
    lanes_cap = max(128, vmem_budget_bytes // per_lane_vmem)
    lanes_target = min(lanes_target, lanes_cap)

    if HW >= lanes_target:
        # Large feature map: one batch element per step, big lane tile.
        t_n = 1
        t_hw = max(128, (min(HW, lanes_target) // 128) * 128)
    else:
        # Small feature map: full HW per step, fold the batch axis.
        t_hw = HW
        t_n = max(1, min(N, lanes_target // max(1, HW)))

    # Keep >= 2 grid steps when possible so both v7x TensorCores get work.
    if pl.cdiv(N, t_n) * pl.cdiv(HW, t_hw) < 2:
        if t_n > 1:
            t_n = pl.cdiv(t_n, 2)
        elif HW >= 256:
            t_hw = ((pl.cdiv(HW, 2) + 127) // 128) * 128

    # Inner lane chunk: keep the (hidden, chunk) intermediate in vregs.
    chunk = t_hw
    if t_hw > 512:
        for c in (512, 256, 128):
            if t_hw % c == 0:
                chunk = c
                break
    n_chunks = t_hw // chunk

    grid = (pl.cdiv(N, t_n), pl.cdiv(HW, t_hw))
    kernel = make_mid_head_kernel(t_n, chunk, n_chunks)

    out = pl.pallas_call(
        kernel,
        out_shape=jax.ShapeDtypeStruct((N, 1, HW), jnp.float32),
        grid_spec=pltpu.PrefetchScalarGridSpec(
            num_scalar_prefetch=0,
            grid=grid,
            in_specs=[
                pl.BlockSpec((t_n, C_in, t_hw), lambda n, j: (n, 0, j)),   # x block
                pl.BlockSpec((hidden, C_in), lambda n, j: (0, 0)),          # W1 resident
                pl.BlockSpec((hidden, 1), lambda n, j: (0, 0)),             # b1 resident
                pl.BlockSpec((1, hidden), lambda n, j: (0, 0)),             # W2 resident
                pl.BlockSpec(memory_space=pltpu.MemorySpace.SMEM),          # b2 scalar
            ],
            out_specs=pl.BlockSpec((t_n, 1, t_hw), lambda n, j: (n, 0, j)),
        ),
        compiler_params=pltpu.CompilerParams(
            dimension_semantics=("parallel", "parallel"),
        ),
    )(x, w1, b1, w2, b2)

    # Free reshape back to NCHW.
    return out.reshape(N, 1, H, W)


def reference_forward(x_nchw, w1, b1, w2, b2):
    # Pure-JAX reference of the same math (1x1 conv == dense over channels).
    h = jnp.einsum("oi,nihw->nohw", w1, x_nchw) + b1.reshape(1, -1, 1, 1)
    h = jnp.maximum(h, 0.0)
    y = jnp.einsum("oi,nihw->nohw", w2, h) + b2.reshape(1, -1, 1, 1)
    return jnp.tanh(y)


if __name__ == "__main__":
    # Small shapes consistent with the module (input_dim -> hidden_dim -> 1).
    N, C_in, H, W = 2, 8, 16, 16
    hidden = 32

    key = jax.random.PRNGKey(0)
    kx, kw1, kb1, kw2, kb2 = jax.random.split(key, 5)

    x = jax.random.normal(kx, (N, C_in, H, W), dtype=jnp.float32)
    # Conv2d(kernel_size=1) weights as dense (out_channels, in_channels) matrices.
    w1 = jax.random.normal(kw1, (hidden, C_in), dtype=jnp.float32) * 0.1
    b1 = jax.random.normal(kb1, (hidden, 1), dtype=jnp.float32) * 0.1
    w2 = jax.random.normal(kw2, (1, hidden), dtype=jnp.float32) * 0.1
    b2 = jax.random.normal(kb2, (1, 1), dtype=jnp.float32) * 0.1

    y = mid_head_forward(x, w1, b1, w2, b2)
    y = jax.block_until_ready(y)

    y_ref = reference_forward(x, w1, b1, w2, b2)
    assert y.shape == (N, 1, H, W)
    # bf16 MXU matmuls (f32 accumulation) -> slightly looser tolerance than f32.
    assert jnp.allclose(y, y_ref, atol=2e-2, rtol=2e-2), float(
        jnp.max(jnp.abs(y - y_ref))
    )

    print("KERNEL_OK")
</pallas_src>

<mosaic_0001>
module attributes {stable_mosaic.version = 11 : i64} {
  func.func @kernel(%arg0: i32, %arg1: i32, %arg2: memref<1x8x256xf32, #tpu.memory_space<vmem>>, %arg3: memref<32x8xf32, #tpu.memory_space<vmem>>, %arg4: memref<32x1xf32, #tpu.memory_space<vmem>>, %arg5: memref<1x32xf32, #tpu.memory_space<vmem>>, %arg6: memref<1x1xf32, #tpu.memory_space<smem>>, %arg7: memref<1x1x256xf32, #tpu.memory_space<vmem>>) attributes {dimension_semantics = [#tpu.dimension_semantics<parallel>, #tpu.dimension_semantics<parallel>], iteration_bounds = array<i64: 2, 1>, scalar_prefetch = 0 : i64, scratch_operands = 0 : i64, tpu.core_type = #tpu.core_type<tc>, window_params = [{transform_indices = @transform_0, window_bounds = array<i64: 1, 8, 256>}, {pipeline_mode = #tpu.pipeline_mode<synchronous>, transform_indices = @transform_1, window_bounds = array<i64: 32, 8>}, {pipeline_mode = #tpu.pipeline_mode<synchronous>, transform_indices = @transform_2, window_bounds = array<i64: 32, 1>}, {pipeline_mode = #tpu.pipeline_mode<synchronous>, transform_indices = @transform_3, window_bounds = array<i64: 1, 32>}, {transform_indices = @transform_4, window_bounds = array<i64: 1, 1>}, {transform_indices = @transform_5, window_bounds = array<i64: 1, 1, 256>}]} {
    %c0 = arith.constant 0 : index
    %c0_0 = arith.constant 0 : index
    %0 = vector.load %arg3[%c0, %c0_0] : memref<32x8xf32, #tpu.memory_space<vmem>>, vector<32x8xf32>
    %1 = arith.truncf %0 : vector<32x8xf32> to vector<32x8xbf16>
    %c0_1 = arith.constant 0 : index
    %c0_2 = arith.constant 0 : index
    %2 = vector.load %arg5[%c0_1, %c0_2] : memref<1x32xf32, #tpu.memory_space<vmem>>, vector<1x32xf32>
    %3 = arith.truncf %2 : vector<1x32xf32> to vector<1x32xbf16>
    %c0_3 = arith.constant 0 : index
    %c0_4 = arith.constant 0 : index
    %4 = vector.load %arg4[%c0_3, %c0_4] : memref<32x1xf32, #tpu.memory_space<vmem>>, vector<32x1xf32>
    %c0_5 = arith.constant 0 : index
    %c0_6 = arith.constant 0 : index
    %5 = memref.load %arg6[%c0_5, %c0_6] : memref<1x1xf32, #tpu.memory_space<smem>>
    %c0_7 = arith.constant 0 : index
    %c0_8 = arith.constant 0 : index
    %c0_9 = arith.constant 0 : index
    %6 = vector.load %arg2[%c0_7, %c0_8, %c0_9] : memref<1x8x256xf32, #tpu.memory_space<vmem>>, vector<1x8x256xf32>
    %7 = vector.shape_cast %6 : vector<1x8x256xf32> to vector<8x256xf32>
    %8 = arith.truncf %7 : vector<8x256xf32> to vector<8x256xbf16>
    %cst = arith.constant dense<0.000000e+00> : vector<32x256xf32>
    %9 = tpu.matmul %1, %8, %cst {dimension_numbers = #tpu.dot_dimension_numbers<[1], [0], [0], [1], [0, 0, 1, 1], [], []>} : vector<32x8xbf16>, vector<8x256xbf16>, vector<32x256xf32> -> vector<32x256xf32>
    %10 = vector.broadcast %4 : vector<32x1xf32> to vector<32x256xf32>
    %11 = arith.addf %9, %10 : vector<32x256xf32>
    %cst_10 = arith.constant 0.000000e+00 : f32
    %12 = vector.broadcast %cst_10 : f32 to vector<32x256xf32>
    %13 = arith.maximumf %11, %12 : vector<32x256xf32>
    %14 = arith.truncf %13 : vector<32x256xf32> to vector<32x256xbf16>
    %cst_11 = arith.constant dense<0.000000e+00> : vector<1x256xf32>
    %15 = tpu.matmul %3, %14, %cst_11 {dimension_numbers = #tpu.dot_dimension_numbers<[1], [0], [0], [1], [0, 0, 1, 1], [], []>} : vector<1x32xbf16>, vector<32x256xbf16>, vector<1x256xf32> -> vector<1x256xf32>
    %16 = vector.broadcast %5 : f32 to vector<1x256xf32>
    %17 = arith.addf %15, %16 : vector<1x256xf32>
    %18 = math.tanh %17 : vector<1x256xf32>
    %c0_12 = arith.constant 0 : index
    %c0_13 = arith.constant 0 : index
    %c0_14 = arith.constant 0 : index
    %19 = vector.load %arg7[%c0_12, %c0_13, %c0_14] : memref<1x1x256xf32, #tpu.memory_space<vmem>>, vector<1x1x256xf32>
    %20 = vector.shape_cast %19 : vector<1x1x256xf32> to vector<1x256xf32>
    %21 = vector.shape_cast %18 : vector<1x256xf32> to vector<1x1x256xf32>
    tpu.vector_store %arg7[%c0_12, %c0_13, %c0_14], %21 {strides = array<i32>} : memref<1x1x256xf32, #tpu.memory_space<vmem>>, vector<1x1x256xf32>,
    return
  }
  func.func @transform_0(%arg0: i32, %arg1: i32) -> (i32, i32, i32) {
    %c0_i32 = arith.constant 0 : i32
    %c0_i32_0 = arith.constant 0 : i32
    return %arg0, %c0_i32, %arg1 : i32, i32, i32
  }
  func.func @transform_1(%arg0: i32, %arg1: i32) -> (i32, i32) {
    %c0_i32 = arith.constant 0 : i32
    %c0_i32_0 = arith.constant 0 : i32
    %c0_i32_1 = arith.constant 0 : i32
    return %c0_i32, %c0_i32_0 : i32, i32
  }
  func.func @transform_2(%arg0: i32, %arg1: i32) -> (i32, i32) {
    %c0_i32 = arith.constant 0 : i32
    %c0_i32_0 = arith.constant 0 : i32
    %c0_i32_1 = arith.constant 0 : i32
    return %c0_i32, %c0_i32_0 : i32, i32
  }
  func.func @transform_3(%arg0: i32, %arg1: i32) -> (i32, i32) {
    %c0_i32 = arith.constant 0 : i32
    %c0_i32_0 = arith.constant 0 : i32
    %c0_i32_1 = arith.constant 0 : i32
    return %c0_i32, %c0_i32_0 : i32, i32
  }
  func.func @transform_4(%arg0: i32, %arg1: i32) -> (i32, i32) {
    %c0_i32 = arith.constant 0 : i32
    %c0_i32_0 = arith.constant 0 : i32
    %c0_i32_1 = arith.constant 0 : i32
    return %c0_i32, %c0_i32_0 : i32, i32
  }
  func.func @transform_5(%arg0: i32, %arg1: i32) -> (i32, i32, i32) {
    %c0_i32 = arith.constant 0 : i32
    %c0_i32_0 = arith.constant 0 : i32
    return %arg0, %c0_i32, %arg1 : i32, i32, i32
  }
}

</mosaic_0001>

<bundles_post_ra>
// kernel: tpu_custom_call.1
= control target key start
LH: loop header
LB: loop body
LE: loop exit
PB: predicated region body
PF: predicated region fallthrough
CT: control target
= control target key end

     0   :  { %s813_s0 = inlined_call_operand.vmem [shape: f32[2,8,256], index: 0, kind: input, shape index: {}]   ;;  %s814_s1 = inlined_call_operand.vmem [shape: f32[32,8], index: 1, kind: input, shape index: {}]   ;;  %s815_s2 = inlined_call_operand.vmem [shape: f32[32,1], index: 2, kind: input, shape index: {}]   ;;  %s816_s3 = inlined_call_operand.vmem [shape: f32[1,32], index: 3, kind: input, shape index: {}]   ;;  %s817_s4 = inlined_call_operand.<no memory space> [shape: f32[1,1], index: 4, kind: input, shape index: {}]   ;;  %s818_s5 = inlined_call_operand.hbm [shape: f32[2,1,256], index: 5, kind: output, shape index: {}]  }
   0x1   :  { %10 = sst [smem:[#allocation2]] %s817_s4 }
   0x2   :  { %11 = vsyncpa [#allocation4], 0 }
   0x3   :  { %13 = vsyncpa [#allocation4 + $0x1], 0  ;;  %s689_s20 = smov 0   ;;  %s691_s21 = smov 0  }
   0x4   :  { %s693_s22 = smov 0   ;;  %s695_s23 = smov 0  }
   0x5   :  { %s697_s24 = smov 0   ;;  %s699_s25 = smov 0  }
   0x6 LB: > { %s494_s4 = sadd.s32 4294967295, %s653_s25   ;;  %s495_s26 = sadd.s32 4294967294, %s653_s25   ;;  %s653_s25 = sphi %s699_s25, %s19_s25   ;;  %s649_s24 = sphi %s697_s24, %s825_s24   ;;  %s645_s23 = sphi %s695_s23, %s824_s23   ;;  %s641_s22 = sphi %s693_s22, %s823_s22   ;;  %s637_s21 = sphi %s691_s21, %s822_s21   ;;  %s633_s20 = sphi %s689_s20, %s821_s20  }
   0x7   : > { %s31_s27 = sadd.s32 1, %s649_s24  ;;  %s152_s28 = sadd.s32 1, %s641_s22 }
   0x8   : > { %p33_p0 = scmp.ge.s32.totalorder %s31_s27, 2  ;;  %p162_p1 = scmp.ne.s32.totalorder %s641_s22, %s637_s21 }
   0x9   : > { %p163_p2 = scmp.eq.s32.totalorder %s494_s4, 1  ;;  %p168_p3 = scmp.ne.s32.totalorder %s637_s21, %s633_s20 }
   0xa   : > { %s827_s27 = smov (%p33_p0, %s31_s27), 0  ;;  %p169_p5 = scmp.eq.s32.totalorder %s495_s26, 1 }
   0xb   : > { %p729_p4 = por %p163_p2, %p162_p1  ;;  %s147_s30 = ssub.s32 %s649_s24, %s827_s27 }
   0xc   : > { %p498_p6 = scmp.ge.s32.totalorder %s653_s25, 1  ;;  %p150_p7 = scmp.eq.s32.totalorder %s147_s30, 0 }
   0xd   : > { %p736_p8 = por %p169_p5, %p168_p3  ;;  %p212_p9 = scmp.lt.s32.totalorder %s653_s25, 3 }
   0xe   : > { %s742_s7 = scalar_select %p150_p7, %s641_s22, %s152_s28  }
   0xf   : > { %p213_p10 = pnand %p498_p6, %p212_p9 }
  0x10   : > { %p245_p11 = scmp.lt.s32.totalorder (!%p213_p10), %s645_s23, 1  ;;  %s268_s15 = sld [smem:[#allocation2]] (!%p213_p10) }
  0x11   : > { %216 = sbr.rel (%p213_p10) target bundleno = 344 (0x158), region = 40  ;;  %s509_s18 = sshll.u32 (!%p213_p10), %s645_s23, 1 }
  0x12   : > { %s414_s26 = scalar_lea.hbm (!%p213_p10), %s818_s5, %s509_s18 }
  0x13   : > { %s418_s8 = sshll.u32 (!%p213_p10), %s414_s26, 4  ;;  %s419_s8 = int_to_ptr.hbm [resolvable:$true] %s418_s8 }
  0x14   : > { %s589_s9 = sshra.s32 (!%p213_p10), %s419_s8, 4  ;;  %s590_s9 = int_to_ptr.hbm [resolvable:$true] %s589_s9 }
  0x15   : > { %p596_p1 = scmp.lt.s32.totalorder (!%p213_p10), %s590_s9, %s818_s5 }
  0x16   : > { %v655_v0 = vmov 0   ;;  %v264_v1 = vld [vmem:[%s815_s2] sm:$0xff]  ;;  %s246_s10 = scalar_select %p245_p11, %s645_s23, 1  ;;  %v266_v2 = vld [vmem:[%s815_s2 + $0x10] sm:$0xff]  ;;  %vm300_vm0 = vcmask 1043456   ;;  %v257_v6 = vld [vmem:[%s814_s1 + $0x8] sm:$0xff]  ;;  %v357_v51 = vstv %s268_s15  ;;  %v396_v56 = vlaneseq }
  0x17   : > { %570 = vset.pattern.permute.xlu1 %v655_v0  ;;  %569 = vset.pattern.permute.xlu0 %v655_v0  ;;  %v256_v3 = vld [vmem:[%s814_s1] sm:$0xff]  ;;  %v265_v9 = vld [vmem:[%s815_s2 + $0x8] sm:$0xff]  ;;  %v267_v10 = vld [vmem:[%s815_s2 + $0x18] sm:$0xff]  ;;  %vm293_vm1 = vcmask 64512   ;;  %vm358_vm2 = vcmask 261120   ;;  %vm393_vm3 = vcmask 1040384  }
  0x18   : > { %275 = vperm.xlu1 %570, %v264_v1   ;;  %285 = vperm.xlu0 %569, %v266_v2   ;;  %s512_s13 = sshll.u32 %s246_s10, 4  ;;  %v260_v13 = vpack.c.bf16 %v257_v6, %v256_v3  ;;  %v258_v14 = vld [vmem:[%s814_s1 + $0x10] sm:$0xff]  ;;  %v259_v15 = vld [vmem:[%s814_s1 + $0x18] sm:$0xff]  ;;  %v262_v47 = vld [vmem:[%s816_s3] sm:$0x1]  ;;  %vm398_vm4 = vcmp.lt.s32.totalorder %v396_v56, 256 }
  0x19   : > { %s252_s16 = scalar_lea.vmem %s813_s0, %s512_s13  ;;  %v261_v16 = vpack.c.bf16 %v259_v15, %v258_v14  ;;  %v263_v50 = vpack.c.bf16 %v262_v47, %v262_v47  ;;  %s591_s10 = scalar_lea.hbm %s590_s9, 2 }
  0x1a   : > { %v269_v4 = vld [vmem:[%s252_s16] sm:$0xff]  ;;  %v270_v5 = vld [vmem:[%s252_s16 + $0x8] sm:$0xff]  ;;  %s241_s16 = sand.u32 1, %s637_s21   ;;  %p592_p12 = scmp.ne.s32.totalorder %s590_s9, %s591_s10 }
  0x1b   : > { %v271_v7 = vpack.c.bf16 %v269_v4, %v269_v4  ;;  %v272_v8 = vpack.c.bf16 %v270_v5, %v270_v5  ;;  %s499_s17 = sshll.u32 %s241_s16, 1  ;;  %s402_s23 = scalar_lea.sflag [#allocation4], %s241_s16 }
  0x1c   : > { %s243_s28 = scalar_lea.vmem [#allocation3], %s499_s17  ;;  %p593_p13 = pnand %p592_p12, %p729_p4 }
  0x1d   : > { %v302_v11 = vsel %vm300_vm0, %v271_v7, 0  ;;  %v305_v12 = vsel %vm300_vm0, %v272_v8, 0  ;;  %s416_s30 = sshll.u32 %s243_s28, 4  ;;  %s595_s13 = scalar_lea.hbm %s818_s5, 4  ;;  %s417_s30 = int_to_ptr.vmem [resolvable:$true] %s416_s30 }
  0x1e   : > { %314 = vmatpush.bf16.msra.mxu0 %v302_v11  ;;  %333 = vmatpush.bf16.msra.mxu1 %v305_v12  ;;  %p594_p0 = pneg %p593_p13  ;;  %p597_p2 = scmp.lt.s32.totalorder %s595_s13, %s591_s10 }
  0x20   : > { %280 = vperm.xlu1 %570, %v265_v9   ;;  %290 = vperm.xlu0 %569, %v267_v10   ;;  %p598_p3 = por %p597_p2, %p596_p1 }
  0x21   : > { %502 = vmatmul.msk.bf16.vlgmr.msra.gmra.mxu0 %vm293_vm1, %v260_v13  ;;  %504 = vmatmul.msk.bf16.vlgmr.msra.gmra.mxu1 %vm293_vm1, %v260_v13 }
  0x22   : > { %p599_p5 = pnand %p598_p3, %p594_p0 }
  0x31   : > { %503 = vmatmul.msk.bf16.gmra.mxu0 %vm293_vm1, %v261_v16  ;;  %505 = vmatmul.msk.bf16.gmra.mxu1 %vm293_vm1, %v261_v16 }
  0x8a   : > { %v276_v21 = vpop.permute.xlu1 %275  ;;  %v286_v22 = vpop.permute.xlu0 %285 }
  0x92   : > { %v281_v25 = vpop.permute.xlu1 %280  ;;  %v291_v26 = vpop.permute.xlu0 %290 }
  0x9e   : > { %v316_v17 = vpop.f32.mrf.mxu0  ;;  %v335_v18 = vpop.f32.mrf.mxu1 }
  0x9f   : > { %v317_v35 = vadd.f32 %v316_v17, %v276_v21  ;;  %v336_v36 = vadd.f32 %v335_v18, %v276_v21 }
  0xa1   : > { %v345_v45 = vmax.f32 %v317_v35, 0.0  ;;  %v346_v46 = vmax.f32 %v336_v36, 0.0 }
  0xa6   : > { %v318_v19 = vpop.f32.mrf.mxu0  ;;  %v337_v20 = vpop.f32.mrf.mxu1 }
  0xa7   : > { %v319_v31 = vadd.f32 %v318_v19, %v281_v25  ;;  %v338_v32 = vadd.f32 %v337_v20, %v281_v25 }
  0xa9   : > { %v347_v41 = vmax.f32 %v319_v31, 0.0  ;;  %v348_v42 = vmax.f32 %v338_v32, 0.0 }
  0xab   : > { %v353_v48 = vpack.c.bf16 %v347_v41, %v345_v45  ;;  %v354_v49 = vpack.c.bf16 %v348_v42, %v346_v46 }
  0xae   : > { %v321_v23 = vpop.f32.mrf.mxu0  ;;  %v340_v24 = vpop.f32.mrf.mxu1 }
  0xaf   : > { %v322_v27 = vadd.f32 %v321_v23, %v286_v22  ;;  %v341_v28 = vadd.f32 %v340_v24, %v286_v22 }
  0xb1   : > { %v349_v37 = vmax.f32 %v322_v27, 0.0  ;;  %v350_v38 = vmax.f32 %v341_v28, 0.0 }
  0xb6   : > { %v323_v29 = vpop.f32.mrf.mxu0  ;;  %v342_v30 = vpop.f32.mrf.mxu1 }
  0xb7   : > { %v324_v33 = vadd.f32 %v323_v29, %v291_v26  ;;  %v343_v34 = vadd.f32 %v342_v30, %v291_v26 }
  0xb9   : > { %v351_v39 = vmax.f32 %v324_v33, 0.0  ;;  %v352_v40 = vmax.f32 %v343_v34, 0.0 }
  0xbb   : > { %v355_v43 = vpack.c.bf16 %v351_v39, %v349_v37  ;;  %v356_v44 = vpack.c.bf16 %v352_v40, %v350_v38 }
  0xbd   : > { %368 = vmatpush.bf16.msra.mxu2 %v355_v43  ;;  %381 = vmatpush.bf16.msra.mxu3 %v356_v44 }
  0xc1   : > { %369 = vmatpush.bf16.msra.mxu2 %v353_v48  ;;  %382 = vmatpush.bf16.msra.mxu3 %v354_v49 }
  0xc4   : > { %506 = vmatmul.msk.bf16.vlgmr.msra.gmra.mxu2 %vm358_vm2, %v263_v50  ;;  %507 = vmatmul.msk.bf16.vlgmr.msra.gmra.mxu3 %vm358_vm2, %v263_v50 }
 0x147   : > { %v371_v52 = vpop.f32.mrf.mxu2  ;;  %v384_v53 = vpop.f32.mrf.mxu3 }
 0x148   : > { %v372_v54 = vadd.f32 %v371_v52, %v357_v51  ;;  %v385_v55 = vadd.f32 %v384_v53, %v357_v51 }
 0x14a   : > { %571 = vtanh.f32 %v372_v54 }
 0x14b   : > { %573 = vtanh.f32 %v385_v55 }
 0x14f   : > { %v373_v57 = vpop.f32.mrf.mxu2  ;;  %v386_v58 = vpop.f32.mrf.mxu3 }
 0x150   : > { %v572_v59 = vpop.eup %571 }
 0x151   : > { %v574_v60 = vpop.eup %573 }
 0x152   : > { %v392_v61 = vrot.slane %v574_v60, 7 }
 0x154   : > { %v394_v62 = vsel %vm393_vm3, %v572_v59, %v392_v61 }
 0x155   : > { %400 = vst.msk [vmem:[%s243_s28] sm:$0x3] %vm398_vm4, %v394_v62 }
 0x156   : > { %602 = shalt.err (!%p599_p5)
}
 0x157   : > { %513 = dma.vmem_to_hbm [thread:$0]  (%p729_p4), %s417_s30, 32, %s419_s8, %s402_s23  }
 0x158 PF: > { %p519_p6 = scmp.ge.s32.totalorder %s653_s25, 2  ;;  %s430_s16 = sand.u32 1, %s633_s20  }
 0x159   : > { %s431_s17 = scalar_lea.sflag [#allocation4], %s430_s16 }
 0x15a   : > { %p516_p7 = pnand %p519_p6, %p736_p8 }
 0x15c   : > { %p517_p9 = pneg %p516_p7 }
 0x15e   : > { %628 = dma.done.wait (%p517_p9), %s431_s17, 32  }
 0x15f   : > { %630 = vsyncadd (%p517_p9), %s431_s17, 4294967264  ;;  %s19_s25 = sadd.s32 1, %s653_s25   ;;  %s821_s20 = smov %s637_s21 }
 0x160   : > { %p16_p10 = scmp.ge.s32.totalorder %s19_s25, 4   ;;  %s822_s21 = smov %s641_s22 }
 0x161   : > { %s823_s22 = smov %s742_s7  ;;  %s824_s23 = smov %s649_s24 }
 0x162   : > { %s825_s24 = smov %s827_s27  ;;  %18 = sbr.rel (!%p16_p10) target bundleno = 6 (0x6), region = 75 }
 0x167   :  { %437 = vsyncpa [#allocation4], 1 }
 0x168   :  { %439 = vsyncpa [#allocation4 + $0x1], 1 }

</bundles_post_ra>
